<compile_context>
chip_gen: v6e
topology: v6e:2x2x1
jax: 0.10.0
libtpu: 0.0.40
codegen_flags: <defaults>
</compile_context>

<pallas_src>
import functools

import numpy as np
import jax
import jax.numpy as jnp
from jax.experimental import pallas as pl
from jax.experimental.pallas import tpu as pltpu


def _round_up(x, m):
    return ((x + m - 1) // m) * m


def get_same_padding(kernel, dilation):
    return (kernel * dilation - dilation) // 2


# ----------------------------------------------------------------------------
# Pallas kernel: accumulation of statically-shifted matmuls + bias (+ leaky_relu)
# ----------------------------------------------------------------------------
def _shifted_matmul_kernel(w_ref, b_ref, x_ref, o_ref, *,
                           offsets, l_tile, win, x_resident,
                           apply_act, neg_slope):
    # w_ref: (n_off, C_out_p, C_red)          resident (bf16)
    # b_ref: (C_out_p, 1)                     resident (f32)
    # x_ref: (C_red, L_x)     if x_resident   resident per batch element (bf16)
    #        (C_red, l_tile)  otherwise       per (batch, L-tile) block (bf16)
    # o_ref: (C_out_p, l_tile)
    if x_resident:
        t = pl.program_id(1)
        base = pl.multiple_of(t * l_tile, l_tile)     # lane-tile aligned start
        xw = x_ref[:, pl.ds(base, win)]               # (C_red, l_tile + pad_off)
    else:
        xw = x_ref[...]                               # (C_red, l_tile)

    c_out_p = o_ref.shape[0]
    acc = jnp.zeros((c_out_p, l_tile), jnp.float32)
    for i, off in enumerate(offsets):                 # static unroll over taps
        x_shift = jax.lax.slice_in_dim(xw, off, off + l_tile, axis=1)
        acc = acc + jnp.dot(w_ref[i], x_shift,
                            preferred_element_type=jnp.float32)
    acc = acc + b_ref[...]                            # f32 bias
    if apply_act:
        acc = jnp.where(acc >= 0.0, acc, acc * neg_slope)
    o_ref[...] = acc.astype(o_ref.dtype)


def _shifted_matmul_conv(x, w_stack, bias, offsets, *, apply_act, out_len,
                         out_dtype, neg_slope=0.1, l_tile_max=1024):
    """out[b, :, t] = act( sum_i w_stack[i] @ x[b, :, t + offsets[i]] + bias )

    for t in [0, out_len).  x: (B, C_red, L_in); anything read past L_in is
    zero-padded here.  Returns (B, C_out_p, out_len_padded); caller crops.
    """
    B, c_red, l_in = x.shape
    n_off, c_out_p, c_red_w = w_stack.shape
    assert len(offsets) == n_off
    if c_red_w > c_red:             # reduction dim was padded to 8 at pack time
        x = jnp.pad(x, ((0, 0), (0, c_red_w - c_red), (0, 0)))
        c_red = c_red_w
    assert c_red == c_red_w

    max_off = int(max(offsets))
    l_tile = max(128, min(int(l_tile_max), _round_up(out_len, 128)))
    n_tiles = int(pl.cdiv(out_len, l_tile))
    out_len_p = n_tiles * l_tile

    x_resident = max_off > 0
    pad_off = _round_up(max_off, 128) if x_resident else 0
    win = l_tile + pad_off
    l_x = out_len_p + pad_off

    # bf16 inputs, f32 accumulation on the MXU (halves HBM/VMEM bytes)
    x = x.astype(jnp.bfloat16)
    if l_x > l_in:
        x = jnp.pad(x, ((0, 0), (0, 0), (0, l_x - l_in)))
    elif l_x < l_in:
        x = x[:, :, :l_x]

    w_stack = w_stack.astype(jnp.bfloat16)
    bias = bias.reshape(c_out_p, 1).astype(jnp.float32)

    if x_resident:
        # whole padded row resident in VMEM across the L-tile axis (DMA'd once
        # per batch element); aligned windows are sliced in-kernel (halo support)
        x_spec = pl.BlockSpec((None, c_red, l_x), lambda b, t: (b, 0, 0))
        x_vmem = c_red * l_x * 2
    else:
        # no halo needed: normal per-tile pipelined blocks
        x_spec = pl.BlockSpec((None, c_red, l_tile), lambda b, t: (b, 0, t))
        x_vmem = c_red * l_tile * 2

    kern = functools.partial(
        _shifted_matmul_kernel,
        offsets=tuple(int(o) for o in offsets), l_tile=l_tile, win=win,
        x_resident=x_resident, apply_act=apply_act, neg_slope=neg_slope)

    # crude VMEM budget: double-buffered x/out + resident weight + temporaries
    out_itemsize = jnp.dtype(out_dtype).itemsize
    est = (2 * x_vmem + 2 * w_stack.size * 2
           + 2 * c_out_p * l_tile * out_itemsize
           + 4 * (c_red * win * 2 + c_out_p * l_tile * 4))
    vmem_limit = int(min(max(2 * est, 32 * 2**20), 64 * 2**20))

    return pl.pallas_call(
        kern,
        out_shape=jax.ShapeDtypeStruct((B, c_out_p, out_len_p), out_dtype),
        grid=(B, n_tiles),
        in_specs=[
            pl.BlockSpec((n_off, c_out_p, c_red), lambda b, t: (0, 0, 0)),
            pl.BlockSpec((c_out_p, 1), lambda b, t: (0, 0)),
            x_spec,
        ],
        out_specs=pl.BlockSpec((None, c_out_p, l_tile), lambda b, t: (b, 0, t)),
        compiler_params=pltpu.CompilerParams(
            dimension_semantics=("parallel", "parallel"),
            vmem_limit_bytes=vmem_limit),
    )(w_stack, bias, x)


# ----------------------------------------------------------------------------
# MDC parameters: raw (PyTorch-layout) init + one-time packing for the kernel
# ----------------------------------------------------------------------------
def init_mdc_params(key, in_channel, channel, kernel, stride, dilations):
    """Random effective (post-weight_norm) Conv1d parameters, PyTorch layout."""
    n = len(dilations)
    keys = jax.random.split(key, 2 * n + 2)
    convs = []
    for i in range(n):
        w = jax.random.normal(keys[2 * i], (channel, in_channel, kernel),
                              jnp.float32) * 0.1
        b = jax.random.normal(keys[2 * i + 1], (channel,), jnp.float32) * 0.01
        convs.append((w, b))
    w_out = jax.random.normal(keys[-2], (channel, channel, 3), jnp.float32) * 0.1
    b_out = jax.random.normal(keys[-1], (channel,), jnp.float32) * 0.01
    return {"convs": convs, "conv_out": (w_out, b_out),
            "in_channel": in_channel, "channel": channel,
            "kernel": kernel, "stride": int(stride),
            "dilations": tuple(int(d) for d in dilations)}


def pack_mdc_params(params):
    """Fold the multiscale dilated convs into one effective tap set, pre-scale by
    1/num_dilations, and pack conv_out for the 3-tap decimated matmul.  Runs once."""
    in_ch, ch = params["in_channel"], params["channel"]
    K, dil = params["kernel"], params["dilations"]
    nd = len(dil)
    pads = [get_same_padding(K, d) for d in dil]
    assert all(2 * p == (K - 1) * d for p, d in zip(pads, dil)), (
        "odd kernel size required so all dilated branches share one output length")
    pmax = max(pads)

    c_mid_p = _round_up(ch, 8)      # sublane-aligned output channels
    c_in_p = _round_up(in_ch, 8)    # sublane-aligned reduction dim

    # effective tap set over x left-padded by pmax: offset o = pmax - p_d + k*d
    off_w = {}
    for (w, _), d, p in zip(params["convs"], dil, pads):
        w_np = np.asarray(w, np.float32)
        for k in range(K):
            o = pmax - p + k * d
            if o not in off_w:
                off_w[o] = np.zeros((c_mid_p, c_in_p), np.float32)
            off_w[o][:ch, :in_ch] += w_np[:, :, k]
    offsets = tuple(sorted(off_w))
    w1 = np.stack([off_w[o] for o in offsets], 0) * (1.0 / nd)
    b1 = np.zeros((c_mid_p,), np.float32)
    b1[:ch] = sum(np.asarray(b, np.float32) for _, b in params["convs"]) * (1.0 / nd)

    # conv_out weight packed for the [tap0 | tap1 | tap2] channel stack
    w_out = np.asarray(params["conv_out"][0], np.float32)        # (ch, ch, 3)
    w2 = np.zeros((1, c_mid_p, 3 * c_mid_p), np.float32)
    for k in range(3):
        w2[0, :ch, k * c_mid_p:k * c_mid_p + ch] = w_out[:, :, k]
    b2 = np.zeros((c_mid_p,), np.float32)
    b2[:ch] = np.asarray(params["conv_out"][1], np.float32)

    return {"offsets": offsets, "pmax": pmax,
            "w1": jnp.asarray(w1), "b1": jnp.asarray(b1),
            "w2": jnp.asarray(w2), "b2": jnp.asarray(b2),
            "in_channel": in_ch, "channel": ch, "c_mid_p": c_mid_p,
            "stride": params["stride"]}


# ----------------------------------------------------------------------------
# MDC forward
# ----------------------------------------------------------------------------
def mdc_forward(packed, x, *, l_tile_max=1024):
    """MDC.forward: (B, in_channel, L) -> (B, channel, (L-3)//stride + 1)."""
    B, _, L = x.shape
    s = packed["stride"]
    c_mid_p = packed["c_mid_p"]

    # 1) fused multiscale dilated conv-sum:  xs = (sum_d conv_d(x)) / num_dilations
    x_pml = jnp.pad(x, ((0, 0), (0, 0), (packed["pmax"], 0)))
    inter = _shifted_matmul_conv(
        x_pml, packed["w1"], packed["b1"], packed["offsets"],
        apply_act=False, out_len=L, out_dtype=jnp.bfloat16,
        l_tile_max=l_tile_max)                       # (B, c_mid_p, >=L) bf16

    # 2) conv_out: Conv1d(channel, channel, 3, stride=s)  +  leaky_relu(0.1),
    #    expressed as one matmul over a 3-tap stride-decimated channel stack
    L2 = (L - 3) // s + 1
    assert L2 > 0
    taps = [jax.lax.slice(inter, (0, 0, k),
                          (B, c_mid_p, k + (L2 - 1) * s + 1), (1, 1, s))
            for k in range(3)]
    xb = jnp.concatenate(taps, axis=1)               # (B, 3*c_mid_p, L2)
    out = _shifted_matmul_conv(
        xb, packed["w2"], packed["b2"], (0,),
        apply_act=True, out_len=L2, out_dtype=jnp.float32,
        l_tile_max=l_tile_max)
    return out[:, :packed["channel"], :L2]


# ----------------------------------------------------------------------------
# Pure-JAX reference (f32) of the PyTorch MDC forward, for verification
# ----------------------------------------------------------------------------
def mdc_reference(params, x):
    dn = ("NCH", "OIH", "NCH")
    xs = None
    for (w, b), d in zip(params["convs"], params["dilations"]):
        p = get_same_padding(params["kernel"], d)
        y = jax.lax.conv_general_dilated(
            x, w, window_strides=(1,), padding=[(p, p)], rhs_dilation=(d,),
            dimension_numbers=dn) + b[None, :, None]
        xs = y if xs is None else xs + y
    xm = xs / float(len(params["dilations"]))
    w2, b2 = params["conv_out"]
    y = jax.lax.conv_general_dilated(
        xm, w2, window_strides=(params["stride"],), padding=[(0, 0)],
        dimension_numbers=dn) + b2[None, :, None]
    return jnp.where(y >= 0, y, 0.1 * y)


# ----------------------------------------------------------------------------
if __name__ == "__main__":
    in_channel, channel, kernel, stride = 4, 16, 5, 2
    dilations = (1, 2, 3)
    B, T = 2, 512

    key = jax.random.PRNGKey(0)
    kp, kx = jax.random.split(key)
    params = init_mdc_params(kp, in_channel, channel, kernel, stride, dilations)
    packed = pack_mdc_params(params)

    x = jax.random.normal(kx, (B, in_channel, T), jnp.float32)

    # small l_tile_max so the demo exercises the multi-tile (L_out-tiled) path
    fwd = jax.jit(functools.partial(mdc_forward, packed, l_tile_max=256))
    out = jax.block_until_ready(fwd(x))

    L2 = (T - 3) // stride + 1
    assert out.shape == (B, channel, L2), out.shape

    # bf16-input / f32-accumulate Pallas path vs. f32 pure-JAX reference
    ref = jax.block_until_ready(mdc_reference(params, x))
    np.testing.assert_allclose(np.asarray(out), np.asarray(ref),
                               rtol=5e-2, atol=5e-2)
    print("KERNEL_OK")
</pallas_src>

<mosaic_0001>
module attributes {stable_mosaic.version = 11 : i64} {
  func.func @_shifted_matmul_kernel(%arg0: i32, %arg1: i32, %arg2: memref<11x16x8xbf16, #tpu.memory_space<vmem>>, %arg3: memref<16x1xf32, #tpu.memory_space<vmem>>, %arg4: memref<1x8x640xbf16, #tpu.memory_space<vmem>>, %arg5: memref<1x16x256xbf16, #tpu.memory_space<vmem>>) attributes {dimension_semantics = [#tpu.dimension_semantics<parallel>, #tpu.dimension_semantics<parallel>], iteration_bounds = array<i64: 2, 2>, scalar_prefetch = 0 : i64, scratch_operands = 0 : i64, tpu.core_type = #tpu.core_type<tc>, window_params = [{pipeline_mode = #tpu.pipeline_mode<synchronous>, transform_indices = @transform_0, window_bounds = array<i64: 11, 16, 8>}, {pipeline_mode = #tpu.pipeline_mode<synchronous>, transform_indices = @transform_1, window_bounds = array<i64: 16, 1>}, {transform_indices = @transform_2, window_bounds = array<i64: 1, 8, 640>}, {transform_indices = @transform_3, window_bounds = array<i64: 1, 16, 256>}]} {
    %c256_i32 = arith.constant 256 : i32
    %0 = arith.muli %arg1, %c256_i32 : i32
    %1 = tpu.assume_multiple %0, 256 : i32
    %c0 = arith.constant 0 : index
    %c0_0 = arith.constant 0 : index
    %2 = arith.index_cast %1 : i32 to index
    %3 = vector.load %arg4[%c0, %c0_0, %2] : memref<1x8x640xbf16, #tpu.memory_space<vmem>>, vector<1x8x384xbf16>
    %4 = vector.shape_cast %3 : vector<1x8x384xbf16> to vector<8x384xbf16>
    %cst = arith.constant 0.000000e+00 : f32
    %5 = vector.broadcast %cst : f32 to vector<16x256xf32>
    %6 = vector.extract_strided_slice %4 {offsets = [0, 0], sizes = [8, 256], strides = [1, 1]} : vector<8x384xbf16> to vector<8x256xbf16>
    %c0_1 = arith.constant 0 : index
    %c0_2 = arith.constant 0 : index
    %c0_3 = arith.constant 0 : index
    %7 = vector.load %arg2[%c0_1, %c0_2, %c0_3] : memref<11x16x8xbf16, #tpu.memory_space<vmem>>, vector<1x16x8xbf16>
    %8 = vector.shape_cast %7 : vector<1x16x8xbf16> to vector<16x8xbf16>
    %cst_4 = arith.constant dense<0.000000e+00> : vector<16x256xf32>
    %9 = tpu.matmul %8, %6, %cst_4 {dimension_numbers = #tpu.dot_dimension_numbers<[1], [0], [0], [1], [0, 0, 1, 1], [], []>} : vector<16x8xbf16>, vector<8x256xbf16>, vector<16x256xf32> -> vector<16x256xf32>
    %10 = arith.addf %5, %9 : vector<16x256xf32>
    %11 = vector.extract_strided_slice %4 {offsets = [0, 2], sizes = [8, 256], strides = [1, 1]} : vector<8x384xbf16> to vector<8x256xbf16>
    %c1 = arith.constant 1 : index
    %c0_5 = arith.constant 0 : index
    %c0_6 = arith.constant 0 : index
    %12 = vector.load %arg2[%c1, %c0_5, %c0_6] : memref<11x16x8xbf16, #tpu.memory_space<vmem>>, vector<1x16x8xbf16>
    %13 = vector.shape_cast %12 : vector<1x16x8xbf16> to vector<16x8xbf16>
    %cst_7 = arith.constant dense<0.000000e+00> : vector<16x256xf32>
    %14 = tpu.matmul %13, %11, %cst_7 {dimension_numbers = #tpu.dot_dimension_numbers<[1], [0], [0], [1], [0, 0, 1, 1], [], []>} : vector<16x8xbf16>, vector<8x256xbf16>, vector<16x256xf32> -> vector<16x256xf32>
    %15 = arith.addf %10, %14 : vector<16x256xf32>
    %16 = vector.extract_strided_slice %4 {offsets = [0, 3], sizes = [8, 256], strides = [1, 1]} : vector<8x384xbf16> to vector<8x256xbf16>
    %c2 = arith.constant 2 : index
    %c0_8 = arith.constant 0 : index
    %c0_9 = arith.constant 0 : index
    %17 = vector.load %arg2[%c2, %c0_8, %c0_9] : memref<11x16x8xbf16, #tpu.memory_space<vmem>>, vector<1x16x8xbf16>
    %18 = vector.shape_cast %17 : vector<1x16x8xbf16> to vector<16x8xbf16>
    %cst_10 = arith.constant dense<0.000000e+00> : vector<16x256xf32>
    %19 = tpu.matmul %18, %16, %cst_10 {dimension_numbers = #tpu.dot_dimension_numbers<[1], [0], [0], [1], [0, 0, 1, 1], [], []>} : vector<16x8xbf16>, vector<8x256xbf16>, vector<16x256xf32> -> vector<16x256xf32>
    %20 = arith.addf %15, %19 : vector<16x256xf32>
    %21 = vector.extract_strided_slice %4 {offsets = [0, 4], sizes = [8, 256], strides = [1, 1]} : vector<8x384xbf16> to vector<8x256xbf16>
    %c3 = arith.constant 3 : index
    %c0_11 = arith.constant 0 : index
    %c0_12 = arith.constant 0 : index
    %22 = vector.load %arg2[%c3, %c0_11, %c0_12] : memref<11x16x8xbf16, #tpu.memory_space<vmem>>, vector<1x16x8xbf16>
    %23 = vector.shape_cast %22 : vector<1x16x8xbf16> to vector<16x8xbf16>
    %cst_13 = arith.constant dense<0.000000e+00> : vector<16x256xf32>
    %24 = tpu.matmul %23, %21, %cst_13 {dimension_numbers = #tpu.dot_dimension_numbers<[1], [0], [0], [1], [0, 0, 1, 1], [], []>} : vector<16x8xbf16>, vector<8x256xbf16>, vector<16x256xf32> -> vector<16x256xf32>
    %25 = arith.addf %20, %24 : vector<16x256xf32>
    %26 = vector.extract_strided_slice %4 {offsets = [0, 5], sizes = [8, 256], strides = [1, 1]} : vector<8x384xbf16> to vector<8x256xbf16>
    %c4 = arith.constant 4 : index
    %c0_14 = arith.constant 0 : index
    %c0_15 = arith.constant 0 : index
    %27 = vector.load %arg2[%c4, %c0_14, %c0_15] : memref<11x16x8xbf16, #tpu.memory_space<vmem>>, vector<1x16x8xbf16>
    %28 = vector.shape_cast %27 : vector<1x16x8xbf16> to vector<16x8xbf16>
    %cst_16 = arith.constant dense<0.000000e+00> : vector<16x256xf32>
    %29 = tpu.matmul %28, %26, %cst_16 {dimension_numbers = #tpu.dot_dimension_numbers<[1], [0], [0], [1], [0, 0, 1, 1], [], []>} : vector<16x8xbf16>, vector<8x256xbf16>, vector<16x256xf32> -> vector<16x256xf32>
    %30 = arith.addf %25, %29 : vector<16x256xf32>
    %31 = vector.extract_strided_slice %4 {offsets = [0, 6], sizes = [8, 256], strides = [1, 1]} : vector<8x384xbf16> to vector<8x256xbf16>
    %c5 = arith.constant 5 : index
    %c0_17 = arith.constant 0 : index
    %c0_18 = arith.constant 0 : index
    %32 = vector.load %arg2[%c5, %c0_17, %c0_18] : memref<11x16x8xbf16, #tpu.memory_space<vmem>>, vector<1x16x8xbf16>
    %33 = vector.shape_cast %32 : vector<1x16x8xbf16> to vector<16x8xbf16>
    %cst_19 = arith.constant dense<0.000000e+00> : vector<16x256xf32>
    %34 = tpu.matmul %33, %31, %cst_19 {dimension_numbers = #tpu.dot_dimension_numbers<[1], [0], [0], [1], [0, 0, 1, 1], [], []>} : vector<16x8xbf16>, vector<8x256xbf16>, vector<16x256xf32> -> vector<16x256xf32>
    %35 = arith.addf %30, %34 : vector<16x256xf32>
    %36 = vector.extract_strided_slice %4 {offsets = [0, 7], sizes = [8, 256], strides = [1, 1]} : vector<8x384xbf16> to vector<8x256xbf16>
    %c6 = arith.constant 6 : index
    %c0_20 = arith.constant 0 : index
    %c0_21 = arith.constant 0 : index
    %37 = vector.load %arg2[%c6, %c0_20, %c0_21] : memref<11x16x8xbf16, #tpu.memory_space<vmem>>, vector<1x16x8xbf16>
    %38 = vector.shape_cast %37 : vector<1x16x8xbf16> to vector<16x8xbf16>
    %cst_22 = arith.constant dense<0.000000e+00> : vector<16x256xf32>
    %39 = tpu.matmul %38, %36, %cst_22 {dimension_numbers = #tpu.dot_dimension_numbers<[1], [0], [0], [1], [0, 0, 1, 1], [], []>} : vector<16x8xbf16>, vector<8x256xbf16>, vector<16x256xf32> -> vector<16x256xf32>
    %40 = arith.addf %35, %39 : vector<16x256xf32>
    %41 = vector.extract_strided_slice %4 {offsets = [0, 8], sizes = [8, 256], strides = [1, 1]} : vector<8x384xbf16> to vector<8x256xbf16>
    %c7 = arith.constant 7 : index
    %c0_23 = arith.constant 0 : index
    %c0_24 = arith.constant 0 : index
    %42 = vector.load %arg2[%c7, %c0_23, %c0_24] : memref<11x16x8xbf16, #tpu.memory_space<vmem>>, vector<1x16x8xbf16>
    %43 = vector.shape_cast %42 : vector<1x16x8xbf16> to vector<16x8xbf16>
    %cst_25 = arith.constant dense<0.000000e+00> : vector<16x256xf32>
    %44 = tpu.matmul %43, %41, %cst_25 {dimension_numbers = #tpu.dot_dimension_numbers<[1], [0], [0], [1], [0, 0, 1, 1], [], []>} : vector<16x8xbf16>, vector<8x256xbf16>, vector<16x256xf32> -> vector<16x256xf32>
    %45 = arith.addf %40, %44 : vector<16x256xf32>
    %46 = vector.extract_strided_slice %4 {offsets = [0, 9], sizes = [8, 256], strides = [1, 1]} : vector<8x384xbf16> to vector<8x256xbf16>
    %c8 = arith.constant 8 : index
    %c0_26 = arith.constant 0 : index
    %c0_27 = arith.constant 0 : index
    %47 = vector.load %arg2[%c8, %c0_26, %c0_27] : memref<11x16x8xbf16, #tpu.memory_space<vmem>>, vector<1x16x8xbf16>
    %48 = vector.shape_cast %47 : vector<1x16x8xbf16> to vector<16x8xbf16>
    %cst_28 = arith.constant dense<0.000000e+00> : vector<16x256xf32>
    %49 = tpu.matmul %48, %46, %cst_28 {dimension_numbers = #tpu.dot_dimension_numbers<[1], [0], [0], [1], [0, 0, 1, 1], [], []>} : vector<16x8xbf16>, vector<8x256xbf16>, vector<16x256xf32> -> vector<16x256xf32>
    %50 = arith.addf %45, %49 : vector<16x256xf32>
    %51 = vector.extract_strided_slice %4 {offsets = [0, 10], sizes = [8, 256], strides = [1, 1]} : vector<8x384xbf16> to vector<8x256xbf16>
    %c9 = arith.constant 9 : index
    %c0_29 = arith.constant 0 : index
    %c0_30 = arith.constant 0 : index
    %52 = vector.load %arg2[%c9, %c0_29, %c0_30] : memref<11x16x8xbf16, #tpu.memory_space<vmem>>, vector<1x16x8xbf16>
    %53 = vector.shape_cast %52 : vector<1x16x8xbf16> to vector<16x8xbf16>
    %cst_31 = arith.constant dense<0.000000e+00> : vector<16x256xf32>
    %54 = tpu.matmul %53, %51, %cst_31 {dimension_numbers = #tpu.dot_dimension_numbers<[1], [0], [0], [1], [0, 0, 1, 1], [], []>} : vector<16x8xbf16>, vector<8x256xbf16>, vector<16x256xf32> -> vector<16x256xf32>
    %55 = arith.addf %50, %54 : vector<16x256xf32>
    %56 = vector.extract_strided_slice %4 {offsets = [0, 12], sizes = [8, 256], strides = [1, 1]} : vector<8x384xbf16> to vector<8x256xbf16>
    %c10 = arith.constant 10 : index
    %c0_32 = arith.constant 0 : index
    %c0_33 = arith.constant 0 : index
    %57 = vector.load %arg2[%c10, %c0_32, %c0_33] : memref<11x16x8xbf16, #tpu.memory_space<vmem>>, vector<1x16x8xbf16>
    %58 = vector.shape_cast %57 : vector<1x16x8xbf16> to vector<16x8xbf16>
    %cst_34 = arith.constant dense<0.000000e+00> : vector<16x256xf32>
    %59 = tpu.matmul %58, %56, %cst_34 {dimension_numbers = #tpu.dot_dimension_numbers<[1], [0], [0], [1], [0, 0, 1, 1], [], []>} : vector<16x8xbf16>, vector<8x256xbf16>, vector<16x256xf32> -> vector<16x256xf32>
    %60 = arith.addf %55, %59 : vector<16x256xf32>
    %c0_35 = arith.constant 0 : index
    %c0_36 = arith.constant 0 : index
    %61 = vector.load %arg3[%c0_35, %c0_36] : memref<16x1xf32, #tpu.memory_space<vmem>>, vector<16x1xf32>
    %62 = vector.broadcast %61 : vector<16x1xf32> to vector<16x256xf32>
    %63 = arith.addf %60, %62 : vector<16x256xf32>
    %64 = arith.truncf %63 : vector<16x256xf32> to vector<16x256xbf16>
    %c0_37 = arith.constant 0 : index
    %c0_38 = arith.constant 0 : index
    %c0_39 = arith.constant 0 : index
    %65 = vector.load %arg5[%c0_37, %c0_38, %c0_39] : memref<1x16x256xbf16, #tpu.memory_space<vmem>>, vector<1x16x256xbf16>
    %66 = vector.shape_cast %65 : vector<1x16x256xbf16> to vector<16x256xbf16>
    %67 = vector.shape_cast %64 : vector<16x256xbf16> to vector<1x16x256xbf16>
    tpu.vector_store %arg5[%c0_37, %c0_38, %c0_39], %67 {strides = array<i32>} : memref<1x16x256xbf16, #tpu.memory_space<vmem>>, vector<1x16x256xbf16>,
    return
  }
  func.func @transform_0(%arg0: i32, %arg1: i32) -> (i32, i32, i32) {
    %c0_i32 = arith.constant 0 : i32
    %c0_i32_0 = arith.constant 0 : i32
    %c0_i32_1 = arith.constant 0 : i32
    %c0_i32_2 = arith.constant 0 : i32
    return %c0_i32, %c0_i32_0, %c0_i32_1 : i32, i32, i32
  }
  func.func @transform_1(%arg0: i32, %arg1: i32) -> (i32, i32) {
    %c0_i32 = arith.constant 0 : i32
    %c0_i32_0 = arith.constant 0 : i32
    %c0_i32_1 = arith.constant 0 : i32
    return %c0_i32, %c0_i32_0 : i32, i32
  }
  func.func @transform_2(%arg0: i32, %arg1: i32) -> (i32, i32, i32) {
    %c0_i32 = arith.constant 0 : i32
    %c0_i32_0 = arith.constant 0 : i32
    %c0_i32_1 = arith.constant 0 : i32
    return %arg0, %c0_i32, %c0_i32_0 : i32, i32, i32
  }
  func.func @transform_3(%arg0: i32, %arg1: i32) -> (i32, i32, i32) {
    %c0_i32 = arith.constant 0 : i32
    %c0_i32_0 = arith.constant 0 : i32
    return %arg0, %c0_i32, %arg1 : i32, i32, i32
  }
}

module attributes {stable_mosaic.version = 11 : i64} {
  func.func @_shifted_matmul_kernel(%arg0: i32, %arg1: i32, %arg2: memref<1x16x48xbf16, #tpu.memory_space<vmem>>, %arg3: memref<16x1xf32, #tpu.memory_space<vmem>>, %arg4: memref<1x48x256xbf16, #tpu.memory_space<vmem>>, %arg5: memref<1x16x256xf32, #tpu.memory_space<vmem>>) attributes {dimension_semantics = [#tpu.dimension_semantics<parallel>, #tpu.dimension_semantics<parallel>], iteration_bounds = array<i64: 2, 1>, scalar_prefetch = 0 : i64, scratch_operands = 0 : i64, tpu.core_type = #tpu.core_type<tc>, window_params = [{pipeline_mode = #tpu.pipeline_mode<synchronous>, transform_indices = @transform_0, window_bounds = array<i64: 1, 16, 48>}, {pipeline_mode = #tpu.pipeline_mode<synchronous>, transform_indices = @transform_1, window_bounds = array<i64: 16, 1>}, {transform_indices = @transform_2, window_bounds = array<i64: 1, 48, 256>}, {transform_indices = @transform_3, window_bounds = array<i64: 1, 16, 256>}]} {
    %c0 = arith.constant 0 : index
    %c0_0 = arith.constant 0 : index
    %c0_1 = arith.constant 0 : index
    %0 = vector.load %arg4[%c0, %c0_0, %c0_1] : memref<1x48x256xbf16, #tpu.memory_space<vmem>>, vector<1x48x256xbf16>
    %1 = vector.shape_cast %0 : vector<1x48x256xbf16> to vector<48x256xbf16>
    %cst = arith.constant 0.000000e+00 : f32
    %2 = vector.broadcast %cst : f32 to vector<16x256xf32>
    %3 = vector.extract_strided_slice %1 {offsets = [0, 0], sizes = [48, 256], strides = [1, 1]} : vector<48x256xbf16> to vector<48x256xbf16>
    %c0_2 = arith.constant 0 : index
    %c0_3 = arith.constant 0 : index
    %c0_4 = arith.constant 0 : index
    %4 = vector.load %arg2[%c0_2, %c0_3, %c0_4] : memref<1x16x48xbf16, #tpu.memory_space<vmem>>, vector<1x16x48xbf16>
    %5 = vector.shape_cast %4 : vector<1x16x48xbf16> to vector<16x48xbf16>
    %cst_5 = arith.constant dense<0.000000e+00> : vector<16x256xf32>
    %6 = tpu.matmul %5, %3, %cst_5 {dimension_numbers = #tpu.dot_dimension_numbers<[1], [0], [0], [1], [0, 0, 1, 1], [], []>} : vector<16x48xbf16>, vector<48x256xbf16>, vector<16x256xf32> -> vector<16x256xf32>
    %7 = arith.addf %2, %6 : vector<16x256xf32>
    %c0_6 = arith.constant 0 : index
    %c0_7 = arith.constant 0 : index
    %8 = vector.load %arg3[%c0_6, %c0_7] : memref<16x1xf32, #tpu.memory_space<vmem>>, vector<16x1xf32>
    %9 = vector.broadcast %8 : vector<16x1xf32> to vector<16x256xf32>
    %10 = arith.addf %7, %9 : vector<16x256xf32>
    %cst_8 = arith.constant 0.000000e+00 : f32
    %11 = vector.broadcast %cst_8 : f32 to vector<16x256xf32>
    %12 = arith.cmpf oge, %10, %11 : vector<16x256xf32>
    %cst_9 = arith.constant 1.000000e-01 : f32
    %13 = vector.broadcast %cst_9 : f32 to vector<16x256xf32>
    %14 = arith.mulf %10, %13 : vector<16x256xf32>
    %15 = arith.select %12, %10, %14 : vector<16x256xi1>, vector<16x256xf32>
    %c0_10 = arith.constant 0 : index
    %c0_11 = arith.constant 0 : index
    %c0_12 = arith.constant 0 : index
    %16 = vector.load %arg5[%c0_10, %c0_11, %c0_12] : memref<1x16x256xf32, #tpu.memory_space<vmem>>, vector<1x16x256xf32>
    %17 = vector.shape_cast %16 : vector<1x16x256xf32> to vector<16x256xf32>
    %18 = vector.shape_cast %15 : vector<16x256xf32> to vector<1x16x256xf32>
    tpu.vector_store %arg5[%c0_10, %c0_11, %c0_12], %18 {strides = array<i32>} : memref<1x16x256xf32, #tpu.memory_space<vmem>>, vector<1x16x256xf32>,
    return
  }
  func.func @transform_0(%arg0: i32, %arg1: i32) -> (i32, i32, i32) {
    %c0_i32 = arith.constant 0 : i32
    %c0_i32_0 = arith.constant 0 : i32
    %c0_i32_1 = arith.constant 0 : i32
    %c0_i32_2 = arith.constant 0 : i32
    return %c0_i32, %c0_i32_0, %c0_i32_1 : i32, i32, i32
  }
  func.func @transform_1(%arg0: i32, %arg1: i32) -> (i32, i32) {
    %c0_i32 = arith.constant 0 : i32
    %c0_i32_0 = arith.constant 0 : i32
    %c0_i32_1 = arith.constant 0 : i32
    return %c0_i32, %c0_i32_0 : i32, i32
  }
  func.func @transform_2(%arg0: i32, %arg1: i32) -> (i32, i32, i32) {
    %c0_i32 = arith.constant 0 : i32
    %c0_i32_0 = arith.constant 0 : i32
    return %arg0, %c0_i32, %arg1 : i32, i32, i32
  }
  func.func @transform_3(%arg0: i32, %arg1: i32) -> (i32, i32, i32) {
    %c0_i32 = arith.constant 0 : i32
    %c0_i32_0 = arith.constant 0 : i32
    return %arg0, %c0_i32, %arg1 : i32, i32, i32
  }
}

</mosaic_0001>

<bundles_post_ra>
// kernel: mdc_forward.2
= control target key start
LH: loop header
LB: loop body
LE: loop exit
PB: predicated region body
PF: predicated region fallthrough
CT: control target
= control target key end

     0   :  { %s1375_s12 = smov 0   ;;  %s1377_s13 = smov 0   ;;  %s1554_s0 = inlined_call_operand.vmem [shape: bf16[11,16,8], index: 0, kind: input, shape index: {}]   ;;  %s1555_s1 = inlined_call_operand.vmem [shape: f32[16,1], index: 1, kind: input, shape index: {}]   ;;  %s1556_s2 = inlined_call_operand.vmem [shape: bf16[2,8,640], index: 2, kind: input, shape index: {}]   ;;  %s1557_s3 = inlined_call_operand.vmem [shape: bf16[2,16,512], index: 3, kind: output, shape index: {}]  }
   0x1   :  { %s1379_s14 = smov 0   ;;  %s1381_s15 = smov 0  }
   0x2   :  { %s1383_s16 = smov 0   ;;  %s1385_s17 = smov 0  }
   0x3   :  { %s1387_s18 = smov 0  }
   0x4 LB: > { %s22_s19 = sadd.s32 1, %s1334_s16  ;;  %s25_s20 = sadd.s32 1, %s1338_s17  ;;  %s1342_s18 = sphi %s1387_s18, %s13_s18   ;;  %s1338_s17 = sphi %s1385_s17, %s1564_s17   ;;  %s1334_s16 = sphi %s1383_s16, %s1563_s16   ;;  %s1330_s15 = sphi %s1381_s15, %s1562_s15   ;;  %s1326_s14 = sphi %s1379_s14, %s1561_s14   ;;  %s1322_s13 = sphi %s1377_s13, %s1560_s13   ;;  %s1318_s12 = sphi %s1375_s12, %s1559_s12  }
   0x5   : > { %p23_p0 = scmp.ge.s32.totalorder %s22_s19, 2  ;;  %s1129_s21 = sadd.s32 4294967295, %s1342_s18  }
   0x6   : > { %p112_p1 = scmp.ne.s32.totalorder %s1322_s13, %s1318_s12  ;;  %p113_p2 = scmp.eq.s32.totalorder %s1129_s21, 3 }
   0x7   : > { %s1566_s19 = smov (%p23_p0, %s22_s19), 0  ;;  %s1568_s20 = smov (!%p23_p0, %s25_s20), %s1338_s17 }
   0x8   : > { %s98_s22 = ssub.s32 %s1334_s16, %s1566_s19  ;;  %p27_p3 = scmp.ge.s32.totalorder %s1568_s20, 2 }
   0x9   : > { %p1133_p4 = scmp.ge.s32.totalorder %s1342_s18, 1  ;;  %p1421_p5 = por %p113_p2, %p112_p1 }
   0xa   : > { %p151_p6 = scmp.lt.s32.totalorder %s1342_s18, 5  ;;  %s1570_s20 = smov (%p27_p3, %s1568_s20), 0 }
   0xb   : > { %s97_s24 = ssub.s32 %s1338_s17, %s1570_s20  ;;  %s102_s26 = sadd.s32 1, %s1322_s13 }
   0xc   : > { %p152_p7 = pnand %p1133_p4, %p151_p6  ;;  %s99_s25 = sor.u32 %s98_s22, %s97_s24 }
   0xd   : > { %p100_p8 = scmp.eq.s32.totalorder %s99_s25, 0  ;;  %p174_p9 = scmp.lt.s32.totalorder (!%p152_p7), %s1330_s15, 1 }
   0xe   : > { %155 = sbr.rel (%p152_p7) target bundleno = 418 (0x1a2), region = 32  ;;  %s1136_s28 = sshll.u32 (!%p152_p7), %s1326_s14, 8 }
   0xf   : > { %s1432_s27 = scalar_select %p100_p8, %s1322_s13, %s102_s26  }
  0x10   : > { %s182_s29 = sshra.s32 (!%p152_p7), %s1136_s28, 7  ;;  %s1345_s10 = smov (!%p152_p7), 126  }
  0x11   : > { %s1137_s5 = sshll.u32 (!%p152_p7), %s182_s29, 2  ;;  %s1346_s22 = smov (!%p152_p7), 125  }
  0x12   : > { %s1347_s24 = smov (!%p152_p7), 124   ;;  %s1348_s25 = smov (!%p152_p7), 123  }
  0x13   : > { %s175_s30 = scalar_select %p174_p9, %s1330_s15, 1  ;;  %v1344_v0 = vmov 0   ;;  %vm219_vm0 = vcmask 1043456   ;;  %v1278_v6 = vld [vmem:[%s1554_s0] sm:$0xff]   ;;  %vm215_vm1 = vcmask 64512   ;;  %v984_v7 = vld [vmem:[%s1555_s1 + $0x8] sm:$0xff] }
  0x14   : > { %258 = vmatprep.mubr.bf16.mxu0 %v1344_v0  ;;  %315 = vmatprep.mubr.bf16.mxu1 %v1344_v0  ;;  %s1349_s26 = smov 122   ;;  %s1350_s28 = smov 121   ;;  %v983_v8 = vld [vmem:[%s1555_s1] sm:$0xff]  ;;  %vm212_vm2 = vcmask 1031168   ;;  %vm340_vm3 = vcmask 1022976   ;;  %v1277_v16 = vld [vmem:[%s1554_s0 + $0x8] sm:$0xff]  }
  0x15   : > { %s1204_s4 = smul.u32 20, %s175_s30  ;;  %1272 = vset.pattern.permute.xlu0 %v1344_v0  ;;  %1273 = vset.pattern.permute.xlu1 %v1344_v0  ;;  %s1351_s29 = smov 120   ;;  %vm413_vm4 = vcmask 1014784   ;;  %v1279_v24 = vld [vmem:[%s1554_s0 + $0x10] sm:$0xff]   ;;  %vm486_vm5 = vcmask 1006592   ;;  %v1280_v30 = vld [vmem:[%s1554_s0 + $0x18] sm:$0xff]  }
  0x16   : > { %s1352_s30 = smov 119   ;;  %v1281_v36 = vld [vmem:[%s1554_s0 + $0x20] sm:$0xff]   ;;  %vm559_vm6 = vcmask 998400   ;;  %vm632_vm7 = vcmask 990208   ;;  %v1282_v44 = vld [vmem:[%s1554_s0 + $0x28] sm:$0xff]   ;;  %v1283_v50 = vld [vmem:[%s1554_s0 + $0x30] sm:$0xff]  }
  0x17   : > { %s178_s8 = scalar_lea.vmem %s1556_s2, %s1204_s4  ;;  %s1353_s4 = smov 118   ;;  %vm705_vm8 = vcmask 982016   ;;  %vm778_vm9 = vcmask 973824   ;;  %v1284_v58 = vld [vmem:[%s1554_s0 + $0x38] sm:$0xff]   ;;  %vm851_vm10 = vcmask 965632   ;;  %vm924_vm11 = vcmask 949248  }
  0x18   : > { %s185_s9 = scalar_lea.vmem %s178_s8, %s1137_s5  ;;  %s1354_s5 = smov 116  }
  0x19   : > { %v1274_v1 = vld [vmem:[%s185_s9 + $0x8] ss:$0 sps:$4 sm:$0xff]   ;;  %v186_v2 = vld [vmem:[%s185_s9] sm:$0xff] }
  0x1a   : > { %v1141_v3 = vcombine.low %v186_v2, %v186_v2  ;;  %v1142_v4 = vcombine.high %v186_v2, %v186_v2  ;;  %210 = vrot.lane.b32.xlu1 %v1274_v1, %s1345_s10 }
  0x1c   : > { %206 = vrot.lane.b32.xlu0 %v1141_v3, %s1345_s10  ;;  %1147 = vmatprep.subr.msk.bf16.mxu1 %vm219_vm0, %v1142_v4  ;;  %v278_v5 = vsel %vm219_vm0, %v1141_v3, 0 }
  0x1d   : > { %298 = vmatpush1.bf16.msra.mxu1 %v278_v5 }
  0x1e   : > { %334 = vrot.lane.b32.xlu1 %v1141_v3, %s1346_s22 }
  0x20   : > { %208 = vrot.lane.b32.xlu0 %v1142_v4, %s1345_s10  ;;  %1148 = vmatmul.mubr.msk.bf16.vlgmr.msra.gmra.mxu1 %vm215_vm1, %v1278_v6 }
  0x21   : > { %457 = vmatprep.mubr.bf16.mxu1 %v1344_v0 }
  0x22   : > { %338 = vrot.lane.b32.xlu1 %v1274_v1, %s1346_s22 }
  0x24   : > { %336 = vrot.lane.b32.xlu0 %v1142_v4, %s1346_s22 }
  0x26   : > { %409 = vrot.lane.b32.xlu1 %v1142_v4, %s1347_s24 }
  0x28   : > { %407 = vrot.lane.b32.xlu0 %v1141_v3, %s1347_s24 }
  0x2a   : > { %480 = vrot.lane.b32.xlu1 %v1141_v3, %s1348_s25 }
  0x2c   : > { %411 = vrot.lane.b32.xlu0 %v1274_v1, %s1347_s24  ;;  %s171_s24 = sand.u32 1, %s1318_s12  }
  0x2e   : > { %484 = vrot.lane.b32.xlu1 %v1274_v1, %s1348_s25 }
  0x30   : > { %482 = vrot.lane.b32.xlu0 %v1142_v4, %s1348_s25  ;;  %s1134_s25 = sshll.u32 %s171_s24, 4 }
  0x31   : > { %s173_s12 = scalar_lea.vmem [#allocation2], %s1134_s25 }
  0x32   : > { %555 = vrot.lane.b32.xlu1 %v1142_v4, %s1349_s26 }
  0x34   : > { %553 = vrot.lane.b32.xlu0 %v1141_v3, %s1349_s26 }
  0x36   : > { %626 = vrot.lane.b32.xlu1 %v1141_v3, %s1350_s28 }
  0x38   : > { %557 = vrot.lane.b32.xlu0 %v1274_v1, %s1349_s26  ;;  %s1197_s26 = sshll.u32 (%p1421_p5), %s1326_s14, 1 }
  0x3a   : > { %630 = vrot.lane.b32.xlu1 %v1274_v1, %s1350_s28 }
  0x3c   : > { %628 = vrot.lane.b32.xlu0 %v1142_v4, %s1350_s28  ;;  %s1198_s28 = sshll.u32 (%p1421_p5), %s1330_s15, 3 }
  0x3e   : > { %701 = vrot.lane.b32.xlu1 %v1142_v4, %s1351_s29 }
  0x40   : > { %699 = vrot.lane.b32.xlu0 %v1141_v3, %s1351_s29 }
  0x42   : > { %772 = vrot.lane.b32.xlu1 %v1141_v3, %s1352_s30 }
  0x44   : > { %703 = vrot.lane.b32.xlu0 %v1274_v1, %s1351_s29  ;;  %s1022_s29 = sadd.s32 (%p1421_p5), %s1198_s28, %s1197_s26 }
  0x46   : > { %776 = vrot.lane.b32.xlu1 %v1274_v1, %s1352_s30 }
  0x48   : > { %774 = vrot.lane.b32.xlu0 %v1142_v4, %s1352_s30  ;;  %s1199_s30 = sshll.u32 (%p1421_p5), %s1022_s29, 2 }
  0x49   : > { %s1024_s6 = scalar_lea.vmem (%p1421_p5), %s1557_s3, %s1199_s30 }
  0x4a   : > { %847 = vrot.lane.b32.xlu1 %v1142_v4, %s1353_s4 }
  0x4c   : > { %845 = vrot.lane.b32.xlu0 %v1141_v3, %s1353_s4 }
  0x4e   : > { %918 = vrot.lane.b32.xlu1 %v1141_v3, %s1354_s5 }
  0x50   : > { %849 = vrot.lane.b32.xlu0 %v1274_v1, %s1353_s4 }
  0x52   : > { %922 = vrot.lane.b32.xlu1 %v1274_v1, %s1354_s5  ;;  %v1285_v1 = vld [vmem:[%s1554_s0 + $0x40] sm:$0xff]  }
  0x54   : > { %920 = vrot.lane.b32.xlu0 %v1142_v4, %s1354_s5 }
  0x56   : > { %992 = vperm.xlu1 %1273, %v984_v7  }
  0x58   : > { %987 = vperm.xlu0 %1272, %v983_v8  }
  0x8c   : > { %v211_v9 = vpop.permute.xlu1 %210 }
  0x8e   : > { %v207_v10 = vpop.permute.xlu0 %206 }
  0x90   : > { %v335_v11 = vpop.permute.xlu1 %334 }
  0x92   : > { %v209_v12 = vpop.permute.xlu0 %208 }
  0x93   : > { %v214_v13 = vsel %vm212_vm2, %v209_v12, %v211_v9  ;;  %v213_v14 = vsel %vm212_vm2, %v207_v10, %v209_v12  ;;  %v1286_v9 = vld [vmem:[%s1554_s0 + $0x48] sm:$0xff]  }
  0x94   : > { %1144 = vmatprep.subr.msk.bf16.mxu0 %vm219_vm0, %v214_v13  ;;  %v221_v15 = vsel %vm219_vm0, %v213_v14, 0  ;;  %v339_v17 = vpop.permute.xlu1 %338 }
  0x95   : > { %241 = vmatpush1.bf16.msra.mxu0 %v221_v15 }
  0x96   : > { %v337_v18 = vpop.permute.xlu0 %336 }
  0x97   : > { %v341_v19 = vsel %vm340_vm3, %v335_v11, %v337_v18  ;;  %v342_v20 = vsel %vm340_vm3, %v337_v18, %v339_v17 }
  0x98   : > { %v347_v21 = vsel %vm219_vm0, %v341_v19, 0  ;;  %1152 = vmatprep.subr.msk.bf16.mxu0 %vm219_vm0, %v342_v20  ;;  %1145 = vmatmul.mubr.msk.bf16.vlgmr.msra.gmra.mxu0 %vm215_vm1, %v1277_v16  ;;  %v410_v22 = vpop.permute.xlu1 %409 }
  0x99   : > { %367 = vmatpush1.bf16.msra.mxu0 %v347_v21  ;;  %384 = vmatprep.mubr.bf16.mxu0 %v1344_v0 }
  0x9a   : > { %v408_v23 = vpop.permute.xlu0 %407 }
  0x9b   : > { %v414_v25 = vsel %vm413_vm4, %v408_v23, %v410_v22 }
  0x9c   : > { %v481_v26 = vpop.permute.xlu1 %480  ;;  %v420_v29 = vsel %vm219_vm0, %v414_v25, 0 }
  0x9e   : > { %v412_v27 = vpop.permute.xlu0 %411 }
  0x9f   : > { %v415_v28 = vsel %vm413_vm4, %v410_v22, %v412_v27 }
  0xa0   : > { %1157 = vmatprep.subr.msk.bf16.mxu1 %vm219_vm0, %v415_v28  ;;  %1153 = vmatmul.mubr.msk.bf16.vlgmr.msra.gmra.mxu0 %vm215_vm1, %v1279_v24  ;;  %v485_v31 = vpop.permute.xlu1 %484 }
  0xa1   : > { %440 = vmatpush1.bf16.msra.mxu1 %v420_v29  ;;  %530 = vmatprep.mubr.bf16.mxu0 %v1344_v0 }
  0xa2   : > { %v483_v32 = vpop.permute.xlu0 %482 }
  0xa3   : > { %v487_v33 = vsel %vm486_vm5, %v481_v26, %v483_v32  ;;  %v488_v34 = vsel %vm486_vm5, %v483_v32, %v485_v31 }
  0xa4   : > { %v493_v35 = vsel %vm219_vm0, %v487_v33, 0  ;;  %1162 = vmatprep.subr.msk.bf16.mxu0 %vm219_vm0, %v488_v34  ;;  %1158 = vmatmul.mubr.msk.bf16.vlgmr.msra.gmra.mxu1 %vm215_vm1, %v1280_v30  ;;  %v556_v37 = vpop.permute.xlu1 %555 }
  0xa5   : > { %513 = vmatpush1.bf16.msra.mxu0 %v493_v35  ;;  %603 = vmatprep.mubr.bf16.mxu1 %v1344_v0 }
  0xa6   : > { %v554_v38 = vpop.permute.xlu0 %553 }
  0xa7   : > { %v560_v39 = vsel %vm559_vm6, %v554_v38, %v556_v37 }
  0xa8   : > { %1163 = vmatmul.mubr.msk.bf16.vlgmr.msra.gmra.mxu0 %vm215_vm1, %v1281_v36  ;;  %v627_v40 = vpop.permute.xlu1 %626  ;;  %v566_v43 = vsel %vm219_vm0, %v560_v39, 0 }
  0xa9   : > { %676 = vmatprep.mubr.bf16.mxu0 %v1344_v0 }
  0xaa   : > { %v558_v41 = vpop.permute.xlu0 %557 }
  0xab   : > { %v561_v42 = vsel %vm559_vm6, %v556_v37, %v558_v41 }
  0xac   : > { %1167 = vmatprep.subr.msk.bf16.mxu1 %vm219_vm0, %v561_v42  ;;  %v631_v45 = vpop.permute.xlu1 %630 }
  0xad   : > { %586 = vmatpush1.bf16.msra.mxu1 %v566_v43 }
  0xae   : > { %v629_v46 = vpop.permute.xlu0 %628 }
  0xaf   : > { %v633_v47 = vsel %vm632_vm7, %v627_v40, %v629_v46  ;;  %v634_v48 = vsel %vm632_vm7, %v629_v46, %v631_v45 }
  0xb0   : > { %v639_v49 = vsel %vm219_vm0, %v633_v47, 0  ;;  %1168 = vmatmul.mubr.msk.bf16.vlgmr.msra.gmra.mxu1 %vm215_vm1, %v1282_v44  ;;  %1172 = vmatprep.subr.msk.bf16.mxu0 %vm219_vm0, %v634_v48  ;;  %v702_v51 = vpop.permute.xlu1 %701 }
  0xb1   : > { %659 = vmatpush1.bf16.msra.mxu0 %v639_v49  ;;  %749 = vmatprep.mubr.bf16.mxu1 %v1344_v0 }
  0xb2   : > { %v700_v52 = vpop.permute.xlu0 %699 }
  0xb3   : > { %v706_v53 = vsel %vm705_vm8, %v700_v52, %v702_v51 }
  0xb4   : > { %1173 = vmatmul.mubr.msk.bf16.vlgmr.msra.gmra.mxu0 %vm215_vm1, %v1283_v50  ;;  %v773_v54 = vpop.permute.xlu1 %772  ;;  %v712_v57 = vsel %vm219_vm0, %v706_v53, 0 }
  0xb5   : > { %822 = vmatprep.mubr.bf16.mxu0 %v1344_v0 }
  0xb6   : > { %v704_v55 = vpop.permute.xlu0 %703 }
  0xb7   : > { %v707_v56 = vsel %vm705_vm8, %v702_v51, %v704_v55 }
  0xb8   : > { %1177 = vmatprep.subr.msk.bf16.mxu1 %vm219_vm0, %v707_v56  ;;  %v777_v59 = vpop.permute.xlu1 %776 }
  0xb9   : > { %732 = vmatpush1.bf16.msra.mxu1 %v712_v57 }
  0xba   : > { %v775_v60 = vpop.permute.xlu0 %774 }
  0xbb   : > { %v779_v61 = vsel %vm778_vm9, %v773_v54, %v775_v60  ;;  %v780_v62 = vsel %vm778_vm9, %v775_v60, %v777_v59 }
  0xbc   : > { %v785_v63 = vsel %vm219_vm0, %v779_v61, 0  ;;  %1178 = vmatmul.mubr.msk.bf16.vlgmr.msra.gmra.mxu1 %vm215_vm1, %v1284_v58  ;;  %1182 = vmatprep.subr.msk.bf16.mxu0 %vm219_vm0, %v780_v62  ;;  %v848_v2 = vpop.permute.xlu1 %847 }
  0xbd   : > { %805 = vmatpush1.bf16.msra.mxu0 %v785_v63  ;;  %895 = vmatprep.mubr.bf16.mxu1 %v1344_v0 }
  0xbe   : > { %v846_v3 = vpop.permute.xlu0 %845 }
  0xbf   : > { %v852_v4 = vsel %vm851_vm10, %v846_v3, %v848_v2 }
  0xc0   : > { %1183 = vmatmul.mubr.msk.bf16.vlgmr.msra.gmra.mxu0 %vm215_vm1, %v1285_v1  ;;  %v919_v5 = vpop.permute.xlu1 %918  ;;  %v858_v8 = vsel %vm219_vm0, %v852_v4, 0 }
  0xc1   : > { %968 = vmatprep.mubr.bf16.mxu0 %v1344_v0  ;;  %v1287_v0 = vld [vmem:[%s1554_s0 + $0x50] sm:$0xff]  }
  0xc2   : > { %v850_v6 = vpop.permute.xlu0 %849 }
  0xc3   : > { %v853_v7 = vsel %vm851_vm10, %v848_v2, %v850_v6 }
  0xc4   : > { %1187 = vmatprep.subr.msk.bf16.mxu1 %vm219_vm0, %v853_v7  ;;  %v923_v10 = vpop.permute.xlu1 %922 }
  0xc5   : > { %878 = vmatpush1.bf16.msra.mxu1 %v858_v8 }
  0xc6   : > { %v921_v11 = vpop.permute.xlu0 %920 }
  0xc7   : > { %v925_v12 = vsel %vm924_vm11, %v919_v5, %v921_v11  ;;  %v926_v13 = vsel %vm924_vm11, %v921_v11, %v923_v10 }
  0xc8   : > { %v931_v14 = vsel %vm219_vm0, %v925_v12, 0  ;;  %1188 = vmatmul.mubr.msk.bf16.vlgmr.msra.gmra.mxu1 %vm215_vm1, %v1286_v9  ;;  %1192 = vmatprep.subr.msk.bf16.mxu0 %vm219_vm0, %v926_v13 }
  0xc9   : > { %951 = vmatpush1.bf16.msra.mxu0 %v931_v14 }
  0xcc   : > { %1193 = vmatmul.mubr.msk.bf16.vlgmr.msra.gmra.mxu0 %vm215_vm1, %v1287_v0 }
  0xe0   : > { %v317_v15 = vpop.f32.mrf.mxu1 }
  0xe2   : > { %v319_v17 = vpop.f32.mrf.mxu1 }
  0xe4   : > { %v321_v20 = vpop.f32.mrf.mxu1 }
  0xe6   : > { %v323_v23 = vpop.f32.mrf.mxu1 }
 0x158   : > { %v260_v16 = vpop.f32.mrf.mxu0 }
 0x159   : > { %v318_v38 = vadd.f32 %v317_v15, %v260_v16 }
 0x15a   : > { %v262_v18 = vpop.f32.mrf.mxu0 }
 0x15b   : > { %v320_v41 = vadd.f32 %v319_v17, %v262_v18 }
 0x15c   : > { %v264_v19 = vpop.f32.mrf.mxu0 }
 0x15d   : > { %v322_v45 = vadd.f32 %v321_v20, %v264_v19 }
 0x15e   : > { %v266_v21 = vpop.f32.mrf.mxu0 }
 0x15f   : > { %v324_v51 = vadd.f32 %v323_v23, %v266_v21 }
 0x160   : > { %v386_v22 = vpop.f32.mrf.mxu0 }
 0x161   : > { %v395_v42 = vadd.f32 %v386_v22, %v318_v38 }
 0x162   : > { %v388_v24 = vpop.f32.mrf.mxu0 }
 0x163   : > { %v396_v46 = vadd.f32 %v388_v24, %v320_v41 }
 0x164   : > { %v390_v25 = vpop.f32.mrf.mxu0  ;;  %v459_v26 = vpop.f32.mrf.mxu1 }
 0x165   : > { %v468_v48 = vadd.f32 %v459_v26, %v395_v42  ;;  %v397_v52 = vadd.f32 %v390_v25, %v322_v45  ;;  %v988_v25 = vpop.permute.xlu0 %987 }
 0x166   : > { %v392_v27 = vpop.f32.mrf.mxu0  ;;  %v461_v28 = vpop.f32.mrf.mxu1 }
 0x167   : > { %v469_v53 = vadd.f32 %v461_v28, %v396_v46  ;;  %v398_v58 = vadd.f32 %v392_v27, %v324_v51 }
 0x168   : > { %v532_v29 = vpop.f32.mrf.mxu0  ;;  %v463_v30 = vpop.f32.mrf.mxu1 }
 0x169   : > { %v541_v55 = vadd.f32 %v532_v29, %v468_v48  ;;  %v470_v59 = vadd.f32 %v463_v30, %v397_v52 }
 0x16a   : > { %v534_v31 = vpop.f32.mrf.mxu0  ;;  %v465_v32 = vpop.f32.mrf.mxu1 }
 0x16b   : > { %v542_v60 = vadd.f32 %v534_v31, %v469_v53  ;;  %v471_v62 = vadd.f32 %v465_v32, %v398_v58 }
 0x16c   : > { %v536_v33 = vpop.f32.mrf.mxu0 }
 0x16d   : > { %v543_v63 = vadd.f32 %v536_v33, %v470_v59 }
 0x16e   : > { %v538_v35 = vpop.f32.mrf.mxu0 }
 0x16f   : > { %v544_v5 = vadd.f32 %v538_v35, %v471_v62 }
 0x170   : > { %v605_v34 = vpop.f32.mrf.mxu1 }
 0x171   : > { %v614_v61 = vadd.f32 %v605_v34, %v541_v55 }
 0x172   : > { %v607_v36 = vpop.f32.mrf.mxu1 }
 0x173   : > { %v615_v1 = vadd.f32 %v607_v36, %v542_v60  ;;  %v993_v36 = vpop.permute.xlu1 %992 }
 0x174   : > { %v678_v37 = vpop.f32.mrf.mxu0  ;;  %v609_v39 = vpop.f32.mrf.mxu1 }
 0x175   : > { %v687_v2 = vadd.f32 %v678_v37, %v614_v61  ;;  %v616_v6 = vadd.f32 %v609_v39, %v543_v63 }
 0x176   : > { %v680_v40 = vpop.f32.mrf.mxu0  ;;  %v611_v43 = vpop.f32.mrf.mxu1 }
 0x177   : > { %v688_v7 = vadd.f32 %v680_v40, %v615_v1  ;;  %v617_v10 = vadd.f32 %v611_v43, %v544_v5 }
 0x178   : > { %v682_v44 = vpop.f32.mrf.mxu0 }
 0x179   : > { %v689_v11 = vadd.f32 %v682_v44, %v616_v6 }
 0x17a   : > { %v684_v49 = vpop.f32.mrf.mxu0 }
 0x17b   : > { %v690_v15 = vadd.f32 %v684_v49, %v617_v10 }
 0x17c   : > { %v751_v47 = vpop.f32.mrf.mxu1 }
 0x17d   : > { %v760_v8 = vadd.f32 %v751_v47, %v687_v2 }
 0x17e   : > { %v753_v50 = vpop.f32.mrf.mxu1 }
 0x17f   : > { %v761_v12 = vadd.f32 %v753_v50, %v688_v7 }
 0x180   : > { %v824_v54 = vpop.f32.mrf.mxu0  ;;  %v755_v56 = vpop.f32.mrf.mxu1 }
 0x181   : > { %v833_v13 = vadd.f32 %v824_v54, %v760_v8  ;;  %v762_v16 = vadd.f32 %v755_v56, %v689_v11 }
 0x182   : > { %v826_v57 = vpop.f32.mrf.mxu0  ;;  %v757_v3 = vpop.f32.mrf.mxu1 }
 0x183   : > { %v834_v17 = vadd.f32 %v826_v57, %v761_v12  ;;  %v763_v21 = vadd.f32 %v757_v3, %v690_v15 }
 0x184   : > { %v828_v4 = vpop.f32.mrf.mxu0 }
 0x185   : > { %v835_v22 = vadd.f32 %v828_v4, %v762_v16 }
 0x186   : > { %v830_v14 = vpop.f32.mrf.mxu0 }
 0x187   : > { %v836_v28 = vadd.f32 %v830_v14, %v763_v21 }
 0x188   : > { %v897_v9 = vpop.f32.mrf.mxu1 }
 0x189   : > { %v906_v18 = vadd.f32 %v897_v9, %v833_v13 }
 0x18a   : > { %v899_v0 = vpop.f32.mrf.mxu1 }
 0x18b   : > { %v907_v23 = vadd.f32 %v899_v0, %v834_v17 }
 0x18c   : > { %v901_v19 = vpop.f32.mrf.mxu1  ;;  %v970_v20 = vpop.f32.mrf.mxu0 }
 0x18d   : > { %v979_v24 = vadd.f32 %v970_v20, %v906_v18  ;;  %v908_v29 = vadd.f32 %v901_v19, %v835_v22 }
 0x18e   : > { %v972_v26 = vpop.f32.mrf.mxu0  ;;  %v903_v27 = vpop.f32.mrf.mxu1 }
 0x18f   : > { %v980_v30 = vadd.f32 %v972_v26, %v907_v23  ;;  %v995_v32 = vadd.f32 %v988_v25, %v979_v24  ;;  %v909_v34 = vadd.f32 %v903_v27, %v836_v28 }
 0x190   : > { %v974_v31 = vpop.f32.mrf.mxu0 }
 0x191   : > { %v996_v33 = vadd.f32 %v988_v25, %v980_v30  ;;  %v981_v35 = vadd.f32 %v974_v31, %v908_v29 }
 0x192   : > { %v976_v37 = vpop.f32.mrf.mxu0 }
 0x193   : > { %v1202_v38 = vpack.c.bf16 %v996_v33, %v995_v32  ;;  %v982_v39 = vadd.f32 %v976_v37, %v909_v34  ;;  %v997_v40 = vadd.f32 %v993_v36, %v981_v35 }
 0x195   : > { %1011 = vst [vmem:[%s173_s12] sm:$0xff] %v1202_v38  ;;  %v998_v41 = vadd.f32 %v993_v36, %v982_v39  ;;  %1019 = sbr.rel (!%p1421_p5) target bundleno = 418 (0x1a2), region = 36 }
 0x197   : > { %v1203_v42 = vpack.c.bf16 %v998_v41, %v997_v40 }
 0x199   : > { %1012 = vst [vmem:[%s173_s12 + $0x8] sm:$0xff] %v1203_v42 }
 0x19c   : > { %v1055_v43 = vld [vmem:[%s173_s12] sm:$0xff] }
 0x19d   : > { %1056 = vst [vmem:[%s1024_s6] sm:$0xff] %v1055_v43 }
 0x1a0   : > { %v1057_v44 = vld [vmem:[%s173_s12 + $0x8] sm:$0xff] }
 0x1a1   : > { %1058 = vst [vmem:[%s1024_s6 + $0x10] sm:$0xff] %v1057_v44 }
 0x1a2 PF: > { %s13_s18 = sadd.s32 1, %s1342_s18   ;;  %s1559_s12 = smov %s1322_s13 }
 0x1a3   : > { %p10_p10 = scmp.ge.s32.totalorder %s13_s18, 6   ;;  %s1560_s13 = smov %s1432_s27 }
 0x1a4   : > { %s1561_s14 = smov %s1334_s16  ;;  %s1562_s15 = smov %s1338_s17 }
 0x1a5   : > { %s1563_s16 = smov %s1566_s19  ;;  %s1564_s17 = smov %s1570_s20 }
 0x1a6   :  { %12 = sbr.rel (!%p10_p10) target bundleno = 4 (0x4), region = 111 }

// kernel: mdc_forward.3
= control target key start
LH: loop header
LB: loop body
LE: loop exit
PB: predicated region body
PF: predicated region fallthrough
CT: control target
= control target key end

     0   :  { %8 = vsyncpa [#allocation3], 0  ;;  %s734_s0 = inlined_call_operand.vmem [shape: bf16[1,16,48], index: 0, kind: input, shape index: {}]   ;;  %s735_s1 = inlined_call_operand.vmem [shape: f32[16,1], index: 1, kind: input, shape index: {}]   ;;  %s736_s2 = inlined_call_operand.vmem [shape: bf16[2,48,256], index: 2, kind: input, shape index: {}]   ;;  %s737_s3 = inlined_call_operand.hbm [shape: f32[2,16,256], index: 3, kind: output, shape index: {}]  }
   0x1   :  { %10 = vsyncpa [#allocation3 + $0x1], 0  ;;  %s607_s12 = smov 0   ;;  %s609_s13 = smov 0  }
   0x2   :  { %s611_s14 = smov 0   ;;  %s613_s15 = smov 0  }
   0x3   :  { %s615_s16 = smov 0   ;;  %s617_s17 = smov 0  }
   0x4 LB: > { %s414_s18 = sadd.s32 4294967295, %s581_s17   ;;  %s415_s19 = sadd.s32 4294967294, %s581_s17   ;;  %s581_s17 = sphi %s617_s17, %s16_s17   ;;  %s577_s16 = sphi %s615_s16, %s744_s16   ;;  %s573_s15 = sphi %s613_s15, %s743_s15   ;;  %s569_s14 = sphi %s611_s14, %s742_s14   ;;  %s565_s13 = sphi %s609_s13, %s741_s13   ;;  %s561_s12 = sphi %s607_s12, %s740_s12  }
   0x5   : > { %s28_s20 = sadd.s32 1, %s577_s16  ;;  %s107_s21 = sadd.s32 1, %s569_s14 }
   0x6   : > { %p30_p0 = scmp.ge.s32.totalorder %s28_s20, 2  ;;  %p117_p1 = scmp.ne.s32.totalorder %s569_s14, %s565_s13 }
   0x7   : > { %p118_p2 = scmp.eq.s32.totalorder %s414_s18, 1  ;;  %p123_p3 = scmp.ne.s32.totalorder %s565_s13, %s561_s12 }
   0x8   : > { %s746_s20 = smov (%p30_p0, %s28_s20), 0  ;;  %p124_p5 = scmp.eq.s32.totalorder %s415_s19, 1 }
   0x9   : > { %p647_p4 = por %p118_p2, %p117_p1  ;;  %s102_s23 = ssub.s32 %s577_s16, %s746_s20 }
   0xa   : > { %p418_p6 = scmp.ge.s32.totalorder %s581_s17, 1  ;;  %p105_p7 = scmp.eq.s32.totalorder %s102_s23, 0 }
   0xb   : > { %p654_p8 = por %p124_p5, %p123_p3  ;;  %p161_p9 = scmp.lt.s32.totalorder %s581_s17, 3 }
   0xc   : > { %s660_s25 = scalar_select %p105_p7, %s569_s14, %s107_s21  }
   0xd   : > { %p162_p10 = pnand %p418_p6, %p161_p9 }
   0xe   : > { %p190_p11 = scmp.lt.s32.totalorder (!%p162_p10), %s573_s15, 1  ;;  %s186_s10 = sand.u32 (!%p162_p10), 1, %s565_s13  }
   0xf   : > { %165 = sbr.rel (%p162_p10) target bundleno = 256 (0x100), region = 32  ;;  %s419_s11 = sshll.u32 (!%p162_p10), %s186_s10, 5 }
  0x10   : > { %s188_s18 = scalar_lea.vmem (!%p162_p10), [#allocation2], %s419_s11  ;;  %s434_s21 = sshll.u32 (!%p162_p10), %s573_s15, 9 }
  0x11   : > { %s335_s19 = sshll.u32 (!%p162_p10), %s188_s18, 4  ;;  %s685_s27 = scalar_lea.hbm (!%p162_p10), %s737_s3, %s434_s21  ;;  %s680_s19 = int_to_ptr.vmem [resolvable:$true] %s335_s19 }
  0x12   : > { %s584_s29 = smov (!%p162_p10), [#allocation2]  }
  0x13   : > { %s509_s30 = sshll.u32 (!%p162_p10), %s584_s29, 4  ;;  %s510_s30 = int_to_ptr.vmem [resolvable:$false] %s509_s30 }
  0x14   : > { %v583_v0 = vmov 0   ;;  %v209_v1 = vld [vmem:[%s735_s1] sm:$0xff]  ;;  %s191_s28 = scalar_select %p190_p11, %s573_s15, 1  ;;  %v210_v2 = vld [vmem:[%s735_s1 + $0x8] sm:$0xff]  ;;  %vm256_vm0 = vcmask 392192  }
  0x15   : > { %292 = vmatprep.mubr.bf16.mxu0 %v583_v0  ;;  %494 = vset.pattern.permute.xlu0 %v583_v0  ;;  %v504_v9 = vld [vmem:[%s734_s0] sm:$0xff]   ;;  %s689_s15 = scalar_lea.sflag [#allocation3], %s186_s10  ;;  %p512_p1 = scmp.lt.s32.totalorder %s680_s19, %s510_s30 }
  0x16   : > { %213 = vperm.xlu0 %494, %v209_v1   ;;  %s435_s4 = smul.u32 48, %s191_s28  ;;  %s505_s28 = scalar_lea.vmem %s680_s19, 512 }
  0x17   : > { %p506_p12 = scmp.ne.s32.totalorder %s680_s19, %s505_s28 }
  0x18   : > { %s197_s7 = scalar_lea.vmem %s736_s2, %s435_s4  ;;  %s511_s4 = scalar_lea.vmem %s510_s30, 1024 }
  0x19   : > { %v495_v3 = vld [vmem:[%s197_s7 + $0x24] ss:$8 sps:$4 sm:$0xff]   ;;  %v497_v4 = vld [vmem:[%s197_s7 + $0x20] ss:$8 sps:$4 sm:$0xff]   ;;  %v498_v5 = vld [vmem:[%s197_s7 + $0x14] ss:$8 sps:$4 sm:$0xff]   ;;  %p507_p13 = pnand %p506_p12, %p647_p4  ;;  %p513_p2 = scmp.lt.s32.totalorder %s511_s4, %s505_s28 }
  0x1a   : > { %218 = vperm.xlu0 %494, %v210_v2   ;;  %270 = vmatprep.subr.bf16.mxu0 %v495_v3  ;;  %v500_v6 = vld [vmem:[%s197_s7 + $0x10] ss:$8 sps:$4 sm:$0xff]   ;;  %v501_v7 = vld [vmem:[%s197_s7 + $0x4] ss:$8 sps:$4 sm:$0xff]   ;;  %v503_v8 = vld [vmem:[%s197_s7] ss:$8 sps:$4 sm:$0xff]  }
  0x1b   : > { %271 = vmatpush1.bf16.msra.mxu0 %v497_v4  ;;  %p508_p0 = pneg %p507_p13  ;;  %p514_p3 = por %p513_p2, %p512_p1 }
  0x1c   : > { %272 = vmatprep.subr.bf16.mxu0 %v498_v5 }
  0x1d   : > { %p515_p5 = pnand %p514_p3, %p508_p0 }
  0x1f   : > { %273 = vmatpush1.bf16.msra.mxu0 %v500_v6 }
  0x20   : > { %274 = vmatprep.subr.bf16.mxu0 %v501_v7 }
  0x23   : > { %275 = vmatpush1.bf16.msra.mxu0 %v503_v8 }
  0x26   : > { %428 = vmatmul.mubr.msk.bf16.vlgmr.msra.gmra.mxu0 %vm256_vm0, %v504_v9 }
  0x91   : > { %v214_v10 = vpop.permute.xlu0 %213 }
  0x95   : > { %v219_v16 = vpop.permute.xlu0 %218 }
  0xe6   : > { %v294_v11 = vpop.f32.mrf.mxu0 }
  0xe7   : > { %v295_v12 = vadd.f32 %v294_v11, %v214_v10 }
  0xe8   : > { %v296_v13 = vpop.f32.mrf.mxu0 }
  0xe9   : > { %vm303_vm1 = vcmp.ge.f32.partialorder %v295_v12, 0.0  ;;  %v307_v14 = vmul.f32 0.1, %v295_v12  ;;  %v297_v15 = vadd.f32 %v296_v13, %v214_v10 }
  0xea   : > { %v298_v17 = vpop.f32.mrf.mxu0 }
  0xeb   : > { %v311_v18 = vsel %vm303_vm1, %v295_v12, %v307_v14  ;;  %vm304_vm2 = vcmp.ge.f32.partialorder %v297_v15, 0.0  ;;  %v308_v19 = vmul.f32 0.1, %v297_v15  ;;  %v299_v20 = vadd.f32 %v298_v17, %v219_v16 }
  0xec   : > { %315 = vst [vmem:[%s188_s18] sm:$0xff] %v311_v18  ;;  %v300_v21 = vpop.f32.mrf.mxu0 }
  0xed   : > { %v312_v22 = vsel %vm304_vm2, %v297_v15, %v308_v19  ;;  %vm305_vm3 = vcmp.ge.f32.partialorder %v299_v20, 0.0  ;;  %v309_v23 = vmul.f32 0.1, %v299_v20  ;;  %v301_v24 = vadd.f32 %v300_v21, %v219_v16 }
  0xee   : > { %316 = vst [vmem:[%s188_s18 + $0x8] sm:$0xff] %v312_v22 }
  0xef   : > { %v313_v25 = vsel %vm305_vm3, %v299_v20, %v309_v23  ;;  %vm306_vm4 = vcmp.ge.f32.partialorder %v301_v24, 0.0  ;;  %v310_v26 = vmul.f32 0.1, %v301_v24 }
  0xf0   : > { %317 = vst [vmem:[%s188_s18 + $0x10] sm:$0xff] %v313_v25 }
  0xf1   : > { %v314_v27 = vsel %vm306_vm4, %v301_v24, %v310_v26 }
  0xf2   : > { %318 = vst [vmem:[%s188_s18 + $0x18] sm:$0xff] %v314_v27 }
  0xf3   : > { %518 = shalt.err (!%p515_p5)
}
  0xf4   : > { %s519_s5 = scalar_lea.hbm %s685_s27, 512  ;;  %s523_s8 = scalar_lea.hbm %s737_s3, 1024 }
  0xf5   : > { %p520_p6 = scmp.ne.s32.totalorder %s685_s27, %s519_s5  ;;  %p524_p10 = scmp.lt.s32.totalorder %s685_s27, %s737_s3 }
  0xf6   : > { %p525_p11 = scmp.lt.s32.totalorder %s523_s8, %s519_s5 }
  0xf7   : > { %p521_p7 = pnand %p520_p6, %p647_p4 }
  0xf8   : > { %p526_p12 = por %p525_p11, %p524_p10 }
  0xf9   : > { %p522_p9 = pneg %p521_p7 }
  0xfb   : > { %p527_p13 = pnand %p526_p12, %p522_p9 }
  0xfd   : > { %530 = shalt.err (!%p527_p13)
}
  0xfe   : > { %s585_s11 = smov 256   ;;  %s586_s18 = smov 16  }
  0xff   : > { %436 = dma.vmem_to_hbm [thread:$0]  (%p647_p4), %s680_s19, 512, %s685_s27, %s689_s15, %s585_s11, %s585_s11, %s586_s18  }
 0x100 PF: > { %p442_p0 = scmp.ge.s32.totalorder %s581_s17, 2  ;;  %s350_s21 = sand.u32 1, %s561_s12  }
 0x101   : > { %s351_s23 = scalar_lea.sflag [#allocation3], %s350_s21 }
 0x102   : > { %p439_p1 = pnand %p442_p0, %p654_p8 }
 0x104   : > { %p440_p2 = pneg %p439_p1 }
 0x106   : > { %556 = dma.done.wait (%p440_p2), %s351_s23, 512  }
 0x107   : > { %558 = vsyncadd (%p440_p2), %s351_s23, 4294966784  ;;  %s16_s17 = sadd.s32 1, %s581_s17   ;;  %s740_s12 = smov %s565_s13 }
 0x108   : > { %p13_p3 = scmp.ge.s32.totalorder %s16_s17, 4   ;;  %s741_s13 = smov %s569_s14 }
 0x109   : > { %s742_s14 = smov %s660_s25  ;;  %s743_s15 = smov %s577_s16 }
 0x10a   : > { %s744_s16 = smov %s746_s20  ;;  %15 = sbr.rel (!%p13_p3) target bundleno = 4 (0x4), region = 67 }
 0x10f   :  { %356 = vsyncpa [#allocation3], 1 }
 0x110   :  { %358 = vsyncpa [#allocation3 + $0x1], 1 }

</bundles_post_ra>
